<compile_context>
chip_gen: v5e
topology: v5e:2x2
jax: 0.10.0
libtpu: 0.0.40
codegen_flags: <defaults>
</compile_context>

<pallas_src>
import functools

import numpy as np

import jax
import jax.numpy as jnp
from jax import lax
from jax.experimental import pallas as pl
from jax.experimental.pallas import tpu as pltpu


def _round_up(x: int, m: int) -> int:
    return ((x + m - 1) // m) * m


def _contrastive_kernel(bi_ref, bj_ref, xi_ref, xj_ref, sqi_ref, sqj_ref,
                        yi_ref, yj_ref, out_ref, acc_ref,
                        *, n: int, tile: int, needs_mask: bool):
    k = pl.program_id(0)
    bi = bi_ref[k]
    bj = bj_ref[k]

    @pl.when(k == 0)
    def _init():
        acc_ref[...] = jnp.zeros_like(acc_ref)

    # Gram on the MXU, contracting the last dim of both operands (no explicit
    # transpose), in the features' native dtype with an f32 accumulator.
    gram = lax.dot_general(
        xi_ref[...], xj_ref[...], (((1,), (1,)), ((), ())),
        preferred_element_type=jnp.float32)                     # (T, T)

    sq_i = sqi_ref[...]                                         # (T, 1) f32
    sq_j = sqj_ref[...]                                         # (1, T) f32

    # torch.cdist (p=2): ||a - b||^2 = ||a||^2 + ||b||^2 - 2 a.b
    dist = jnp.sqrt(jnp.maximum(sq_i + sq_j - 2.0 * gram, 0.0))

    # cosine_similarity with torch's eps = 1e-8:
    # 1/max(||x||, 1e-8) == rsqrt(max(||x||^2, 1e-16))  (EUP, cheap)
    inv_i = lax.rsqrt(jnp.maximum(sq_i, 1e-16))
    inv_j = lax.rsqrt(jnp.maximum(sq_j, 1e-16))
    sim = gram * (inv_i * inv_j)

    eq = yi_ref[...] == yj_ref[...]                             # (T, T) bool
    val = dist - sim
    signed = jnp.where(eq, val, -val)

    if needs_mask:  # static: only traced when N is zero-padded to the tile
        row = bi * tile + lax.broadcasted_iota(jnp.int32, (tile, 1), 0)
        col = bj * tile + lax.broadcasted_iota(jnp.int32, (1, tile), 1)
        signed = jnp.where((row < n) & (col < n), signed, 0.0)

    # Strictly-upper blocks stand in for their symmetric mirror too.
    factor = jnp.where(bj > bi, 2.0, 1.0)
    acc_ref[...] += factor * signed                             # VALU adds only

    @pl.when(k == pl.num_programs(0) - 1)
    def _finalize():
        out_ref[...] = jnp.sum(acc_ref[...], keepdims=True) * (1.0 / float(n * n))


def contrastive_loss(features, y, *, tile=None):
    """features: (N, D); y: any shape with N label elements. Returns scalar loss."""
    n, d = features.shape
    dp = _round_up(d, 128)
    itemsize = jnp.dtype(features.dtype).itemsize

    # Pair-dim tile: the biggest of {512, 256, 128} whose pipelined footprint
    # (2x row tile + 3x col tile + (t,t) f32 epilogue temps/acc) fits ~40 MiB —
    # safe on v5e/v6e and within v7x's 64 MiB physical VMEM.
    if tile is None:
        t = 128
        for cand in (512, 256, 128):
            if 5 * cand * dp * itemsize + 8 * cand * cand * 4 <= (40 << 20):
                t = cand
                break
    else:
        t = tile  # must be a multiple of 128 (lane constraint of the (1,t) tiles)

    if n <= t:  # a single block covers everything
        t = _round_up(n, 8)
    npad = _round_up(n, t)
    needs_mask = npad != n

    # Pad only when required (zeros change neither gram nor norms; padded pairs
    # are masked in-kernel). No dtype upcast: stream features natively.
    if npad != n or dp != d:
        feats = jnp.pad(features, ((0, npad - n), (0, dp - d)))
    else:
        feats = features

    # Labels: keep float labels as floats (torch compares raw values).
    y = y.reshape(-1)
    y = y.astype(jnp.float32 if jnp.issubdtype(y.dtype, jnp.floating) else jnp.int32)
    y_pad = jnp.pad(y, (0, npad - n))
    y_col = y_pad.reshape(npad, 1)
    y_row = y_pad.reshape(1, npad)

    # Squared norms computed once outside the kernel (O(N*D), f32).
    sq = jnp.pad(jnp.sum(features.astype(jnp.float32) ** 2, axis=-1), (0, npad - n))
    sq_col = sq.reshape(npad, 1)
    sq_row = sq.reshape(1, npad)

    # Triangular grid: only block pairs with j >= i, row-major so the row tile
    # stays resident across a run of consecutive steps.
    nb = npad // t
    ii, jj = np.triu_indices(nb)
    bi_arr = jnp.asarray(ii, dtype=jnp.int32)
    bj_arr = jnp.asarray(jj, dtype=jnp.int32)
    nsteps = int(ii.size)

    # 3-deep buffering for the column tile (both block indices can change
    # between steps on the triangular ordering); skip for trivial grids.
    col_kwargs = {"pipeline_mode": pl.Buffered(3)} if nsteps >= 3 else {}

    kernel = functools.partial(_contrastive_kernel, n=n, tile=t, needs_mask=needs_mask)

    out = pl.pallas_call(
        kernel,
        out_shape=jax.ShapeDtypeStruct((1, 1), jnp.float32),
        grid_spec=pltpu.PrefetchScalarGridSpec(
            num_scalar_prefetch=2,
            grid=(nsteps,),
            in_specs=[
                pl.BlockSpec((t, dp), lambda k, bi, bj: (bi[k], 0)),      # row features
                pl.BlockSpec((t, dp), lambda k, bi, bj: (bj[k], 0),       # col features
                             **col_kwargs),
                pl.BlockSpec((t, 1), lambda k, bi, bj: (bi[k], 0)),       # row ||x||^2
                pl.BlockSpec((1, t), lambda k, bi, bj: (0, bj[k])),       # col ||x||^2
                pl.BlockSpec((t, 1), lambda k, bi, bj: (bi[k], 0)),       # row labels
                pl.BlockSpec((1, t), lambda k, bi, bj: (0, bj[k])),       # col labels
            ],
            out_specs=pl.BlockSpec((1, 1), lambda k, bi, bj: (0, 0)),
            scratch_shapes=[pltpu.VMEM((t, t), jnp.float32)],             # elementwise acc
        ),
        compiler_params=pltpu.CompilerParams(
            dimension_semantics=("arbitrary",),   # single resident scalar output
            vmem_limit_bytes=48 << 20,
        ),
    )(bi_arr, bj_arr, feats, feats, sq_col, sq_row, y_col, y_row)
    return out[0, 0]


def _reference_loss(features, y):
    """Pure-JAX reference (direct pairwise differences, like torch for small N)."""
    f = features.astype(jnp.float32)
    y = y.reshape(-1)
    diff = f[:, None, :] - f[None, :, :]
    dist = jnp.sqrt(jnp.sum(diff * diff, axis=-1))
    nrm = jnp.maximum(jnp.linalg.norm(f, axis=-1), 1e-8)
    sim = jnp.dot(f, f.T, precision=lax.Precision.HIGHEST) / (nrm[:, None] * nrm[None, :])
    eq = y[None, :] == y[:, None]
    sign = jnp.where(eq, 1.0, -1.0)
    return jnp.mean(sign * dist) + jnp.mean(-sign * sim)


if __name__ == "__main__":
    key = jax.random.PRNGKey(0)
    kf, ky, kf2, ky2 = jax.random.split(key, 4)

    # Small case: single block, no padding mask.
    feats = jax.random.normal(kf, (8, 32), dtype=jnp.float32)
    labels = jax.random.randint(ky, (8,), 0, 3, dtype=jnp.int32)
    loss = contrastive_loss(feats, labels)
    jax.block_until_ready(loss)
    ref = _reference_loss(feats, labels)
    assert jnp.allclose(loss, ref, rtol=1e-2, atol=1e-2), (loss, ref)

    # Larger case: triangular multi-block grid, padding mask, Buffered(3) column tiles.
    feats2 = jax.random.normal(kf2, (300, 96), dtype=jnp.float32)
    labels2 = jax.random.randint(ky2, (300,), 0, 4, dtype=jnp.int32)
    loss2 = contrastive_loss(feats2, labels2, tile=128)
    jax.block_until_ready(loss2)
    ref2 = _reference_loss(feats2, labels2)
    assert jnp.allclose(loss2, ref2, rtol=1e-2, atol=1e-2), (loss2, ref2)

    print("KERNEL_OK")
</pallas_src>

<mosaic_0001>
module attributes {stable_mosaic.version = 11 : i64} {
  func.func @_contrastive_kernel(%arg0: i32, %arg1: memref<1xi32, #tpu.memory_space<smem>>, %arg2: memref<1xi32, #tpu.memory_space<smem>>, %arg3: memref<8x128xf32, #tpu.memory_space<vmem>>, %arg4: memref<8x128xf32, #tpu.memory_space<vmem>>, %arg5: memref<8x1xf32, #tpu.memory_space<vmem>>, %arg6: memref<1x8xf32, #tpu.memory_space<vmem>>, %arg7: memref<8x1xi32, #tpu.memory_space<vmem>>, %arg8: memref<1x8xi32, #tpu.memory_space<vmem>>, %arg9: memref<1x1xf32, #tpu.memory_space<vmem>>, %arg10: memref<8x8xf32, #tpu.memory_space<vmem>>) attributes {dimension_semantics = [#tpu.dimension_semantics<arbitrary>], iteration_bounds = array<i64: 1>, scalar_prefetch = 2 : i64, scratch_operands = 1 : i64, tpu.core_type = #tpu.core_type<tc>, window_params = [{transform_indices = @transform_0, window_bounds = array<i64: 8, 128>}, {transform_indices = @transform_1, window_bounds = array<i64: 8, 128>}, {transform_indices = @transform_2, window_bounds = array<i64: 8, 1>}, {transform_indices = @transform_3, window_bounds = array<i64: 1, 8>}, {transform_indices = @transform_4, window_bounds = array<i64: 8, 1>}, {transform_indices = @transform_5, window_bounds = array<i64: 1, 8>}, {pipeline_mode = #tpu.pipeline_mode<synchronous>, transform_indices = @transform_6, window_bounds = array<i64: 1, 1>}]} {
    %0 = arith.index_cast %arg0 : i32 to index
    %1 = memref.load %arg1[%0] : memref<1xi32, #tpu.memory_space<smem>>
    %2 = arith.index_cast %arg0 : i32 to index
    %3 = memref.load %arg2[%2] : memref<1xi32, #tpu.memory_space<smem>>
    %c0_i32 = arith.constant 0 : i32
    %4 = arith.cmpi eq, %arg0, %c0_i32 : i32
    %5 = arith.extui %4 : i1 to i32
    %c0_i32_0 = arith.constant 0 : i32
    %6 = arith.cmpi ne, %5, %c0_i32_0 : i32
    scf.if %6 {
      %cst_25 = arith.constant 0.000000e+00 : f32
      %50 = vector.broadcast %cst_25 : f32 to vector<8x8xf32>
      %c0_26 = arith.constant 0 : index
      %c0_27 = arith.constant 0 : index
      %51 = vector.load %arg10[%c0_26, %c0_27] : memref<8x8xf32, #tpu.memory_space<vmem>>, vector<8x8xf32>
      tpu.vector_store %arg10[%c0_26, %c0_27], %50 {strides = array<i32>} : memref<8x8xf32, #tpu.memory_space<vmem>>, vector<8x8xf32>,
    } else {
    }
    %c0 = arith.constant 0 : index
    %c0_1 = arith.constant 0 : index
    %7 = vector.load %arg3[%c0, %c0_1] : memref<8x128xf32, #tpu.memory_space<vmem>>, vector<8x128xf32>
    %c0_2 = arith.constant 0 : index
    %c0_3 = arith.constant 0 : index
    %8 = vector.load %arg4[%c0_2, %c0_3] : memref<8x128xf32, #tpu.memory_space<vmem>>, vector<8x128xf32>
    %cst = arith.constant dense<0.000000e+00> : vector<8x8xf32>
    %9 = tpu.matmul %7, %8, %cst {dimension_numbers = #tpu.dot_dimension_numbers<[1], [1], [0], [0], [0, 0, 1, 0], [], []>} : vector<8x128xf32>, vector<8x128xf32>, vector<8x8xf32> -> vector<8x8xf32>
    %c0_4 = arith.constant 0 : index
    %c0_5 = arith.constant 0 : index
    %10 = vector.load %arg5[%c0_4, %c0_5] : memref<8x1xf32, #tpu.memory_space<vmem>>, vector<8x1xf32>
    %c0_6 = arith.constant 0 : index
    %c0_7 = arith.constant 0 : index
    %11 = vector.load %arg6[%c0_6, %c0_7] : memref<1x8xf32, #tpu.memory_space<vmem>>, vector<1x8xf32>
    %12 = vector.broadcast %10 : vector<8x1xf32> to vector<8x8xf32>
    %13 = vector.broadcast %11 : vector<1x8xf32> to vector<8x8xf32>
    %14 = arith.addf %12, %13 : vector<8x8xf32>
    %cst_8 = arith.constant 2.000000e+00 : f32
    %15 = vector.broadcast %cst_8 : f32 to vector<8x8xf32>
    %16 = arith.mulf %15, %9 : vector<8x8xf32>
    %17 = arith.subf %14, %16 : vector<8x8xf32>
    %cst_9 = arith.constant 0.000000e+00 : f32
    %18 = vector.broadcast %cst_9 : f32 to vector<8x8xf32>
    %19 = arith.maximumf %17, %18 : vector<8x8xf32>
    %20 = math.sqrt %19 : vector<8x8xf32>
    %cst_10 = arith.constant 1.000000e-16 : f32
    %21 = vector.broadcast %cst_10 : f32 to vector<8x1xf32>
    %22 = arith.maximumf %10, %21 : vector<8x1xf32>
    %23 = math.rsqrt %22 : vector<8x1xf32>
    %cst_11 = arith.constant 1.000000e-16 : f32
    %24 = vector.broadcast %cst_11 : f32 to vector<1x8xf32>
    %25 = arith.maximumf %11, %24 : vector<1x8xf32>
    %26 = math.rsqrt %25 : vector<1x8xf32>
    %27 = vector.broadcast %23 : vector<8x1xf32> to vector<8x8xf32>
    %28 = vector.broadcast %26 : vector<1x8xf32> to vector<8x8xf32>
    %29 = arith.mulf %27, %28 : vector<8x8xf32>
    %30 = arith.mulf %9, %29 : vector<8x8xf32>
    %c0_12 = arith.constant 0 : index
    %c0_13 = arith.constant 0 : index
    %31 = vector.load %arg7[%c0_12, %c0_13] : memref<8x1xi32, #tpu.memory_space<vmem>>, vector<8x1xi32>
    %c0_14 = arith.constant 0 : index
    %c0_15 = arith.constant 0 : index
    %32 = vector.load %arg8[%c0_14, %c0_15] : memref<1x8xi32, #tpu.memory_space<vmem>>, vector<1x8xi32>
    %33 = vector.broadcast %31 : vector<8x1xi32> to vector<8x8xi32>
    %34 = vector.broadcast %32 : vector<1x8xi32> to vector<8x8xi32>
    %35 = arith.cmpi eq, %33, %34 : vector<8x8xi32>
    %36 = arith.subf %20, %30 : vector<8x8xf32>
    %cst_16 = arith.constant 0.000000e+00 : f32
    %37 = vector.broadcast %cst_16 : f32 to vector<8x8xf32>
    %38 = arith.subf %37, %36 : vector<8x8xf32>
    %39 = arith.select %35, %36, %38 : vector<8x8xi1>, vector<8x8xf32>
    %40 = arith.cmpi sgt, %3, %1 : i32
    %cst_17 = arith.constant 2.000000e+00 : f32
    %cst_18 = arith.constant 1.000000e+00 : f32
    %41 = arith.select %40, %cst_17, %cst_18 : f32
    %c0_19 = arith.constant 0 : index
    %c0_20 = arith.constant 0 : index
    %42 = vector.load %arg10[%c0_19, %c0_20] : memref<8x8xf32, #tpu.memory_space<vmem>>, vector<8x8xf32>
    %43 = vector.broadcast %41 : f32 to vector<8x8xf32>
    %44 = arith.mulf %43, %39 : vector<8x8xf32>
    %45 = arith.addf %42, %44 : vector<8x8xf32>
    %c0_21 = arith.constant 0 : index
    %c0_22 = arith.constant 0 : index
    %46 = vector.load %arg10[%c0_21, %c0_22] : memref<8x8xf32, #tpu.memory_space<vmem>>, vector<8x8xf32>
    tpu.vector_store %arg10[%c0_21, %c0_22], %45 {strides = array<i32>} : memref<8x8xf32, #tpu.memory_space<vmem>>, vector<8x8xf32>,
    %c0_i32_23 = arith.constant 0 : i32
    %47 = arith.cmpi eq, %arg0, %c0_i32_23 : i32
    %48 = arith.extui %47 : i1 to i32
    %c0_i32_24 = arith.constant 0 : i32
    %49 = arith.cmpi ne, %48, %c0_i32_24 : i32
    scf.if %49 {
      %c0_25 = arith.constant 0 : index
      %c0_26 = arith.constant 0 : index
      %50 = vector.load %arg10[%c0_25, %c0_26] : memref<8x8xf32, #tpu.memory_space<vmem>>, vector<8x8xf32>
      %51 = vector.shape_cast %50 : vector<8x8xf32> to vector<1x8x8xf32>
      %cst_27 = arith.constant dense<0.000000e+00> : vector<1xf32>
      %52 = vector.multi_reduction <add>, %51, %cst_27 [1, 2] : vector<1x8x8xf32> to vector<1xf32>
      %53 = vector.shape_cast %52 : vector<1xf32> to vector<1x1x1xf32>
      %54 = vector.extract %53[0, 0, 0] : f32 from vector<1x1x1xf32>
      %55 = vector.broadcast %54 : f32 to vector<1x1xf32>
      %cst_28 = arith.constant 1.562500e-02 : f32
      %56 = vector.broadcast %cst_28 : f32 to vector<1x1xf32>
      %57 = arith.mulf %55, %56 : vector<1x1xf32>
      %c0_29 = arith.constant 0 : index
      %c0_30 = arith.constant 0 : index
      %58 = vector.load %arg9[%c0_29, %c0_30] : memref<1x1xf32, #tpu.memory_space<vmem>>, vector<1x1xf32>
      tpu.vector_store %arg9[%c0_29, %c0_30], %57 {strides = array<i32>} : memref<1x1xf32, #tpu.memory_space<vmem>>, vector<1x1xf32>,
    } else {
    }
    return
  }
  func.func @transform_0(%arg0: i32, %arg1: memref<1xi32, #tpu.memory_space<smem>>, %arg2: memref<1xi32, #tpu.memory_space<smem>>) -> (i32, i32) {
    %0 = arith.index_cast %arg0 : i32 to index
    %1 = memref.load %arg1[%0] : memref<1xi32, #tpu.memory_space<smem>>
    %c0_i32 = arith.constant 0 : i32
    %c0_i32_0 = arith.constant 0 : i32
    return %1, %c0_i32 : i32, i32
  }
  func.func @transform_1(%arg0: i32, %arg1: memref<1xi32, #tpu.memory_space<smem>>, %arg2: memref<1xi32, #tpu.memory_space<smem>>) -> (i32, i32) {
    %0 = arith.index_cast %arg0 : i32 to index
    %1 = memref.load %arg2[%0] : memref<1xi32, #tpu.memory_space<smem>>
    %c0_i32 = arith.constant 0 : i32
    %c0_i32_0 = arith.constant 0 : i32
    return %1, %c0_i32 : i32, i32
  }
  func.func @transform_2(%arg0: i32, %arg1: memref<1xi32, #tpu.memory_space<smem>>, %arg2: memref<1xi32, #tpu.memory_space<smem>>) -> (i32, i32) {
    %0 = arith.index_cast %arg0 : i32 to index
    %1 = memref.load %arg1[%0] : memref<1xi32, #tpu.memory_space<smem>>
    %c0_i32 = arith.constant 0 : i32
    %c0_i32_0 = arith.constant 0 : i32
    return %1, %c0_i32 : i32, i32
  }
  func.func @transform_3(%arg0: i32, %arg1: memref<1xi32, #tpu.memory_space<smem>>, %arg2: memref<1xi32, #tpu.memory_space<smem>>) -> (i32, i32) {
    %0 = arith.index_cast %arg0 : i32 to index
    %1 = memref.load %arg2[%0] : memref<1xi32, #tpu.memory_space<smem>>
    %c0_i32 = arith.constant 0 : i32
    %c0_i32_0 = arith.constant 0 : i32
    return %c0_i32, %1 : i32, i32
  }
  func.func @transform_4(%arg0: i32, %arg1: memref<1xi32, #tpu.memory_space<smem>>, %arg2: memref<1xi32, #tpu.memory_space<smem>>) -> (i32, i32) {
    %0 = arith.index_cast %arg0 : i32 to index
    %1 = memref.load %arg1[%0] : memref<1xi32, #tpu.memory_space<smem>>
    %c0_i32 = arith.constant 0 : i32
    %c0_i32_0 = arith.constant 0 : i32
    return %1, %c0_i32 : i32, i32
  }
  func.func @transform_5(%arg0: i32, %arg1: memref<1xi32, #tpu.memory_space<smem>>, %arg2: memref<1xi32, #tpu.memory_space<smem>>) -> (i32, i32) {
    %0 = arith.index_cast %arg0 : i32 to index
    %1 = memref.load %arg2[%0] : memref<1xi32, #tpu.memory_space<smem>>
    %c0_i32 = arith.constant 0 : i32
    %c0_i32_0 = arith.constant 0 : i32
    return %c0_i32, %1 : i32, i32
  }
  func.func @transform_6(%arg0: i32, %arg1: memref<1xi32, #tpu.memory_space<smem>>, %arg2: memref<1xi32, #tpu.memory_space<smem>>) -> (i32, i32) {
    %c0_i32 = arith.constant 0 : i32
    %c0_i32_0 = arith.constant 0 : i32
    %c0_i32_1 = arith.constant 0 : i32
    return %c0_i32, %c0_i32_0 : i32, i32
  }
}

</mosaic_0001>

<bundles_post_ra>
// kernel: tpu_custom_call.1
= control target key start
LH: loop header
LB: loop body
LE: loop exit
PB: predicated region body
PF: predicated region fallthrough
CT: control target
= control target key end

     0   :  { %s439_s0 = inlined_call_operand.<no memory space> [shape: s32[1], index: 0, kind: input, shape index: {}]   ;;  %s440_s1 = inlined_call_operand.<no memory space> [shape: s32[1], index: 1, kind: input, shape index: {}]   ;;  %s441_s2 = inlined_call_operand.vmem [shape: f32[8,128], index: 2, kind: input, shape index: {}]   ;;  %s442_s3 = inlined_call_operand.vmem [shape: f32[8,128], index: 3, kind: input, shape index: {}]   ;;  %s443_s4 = inlined_call_operand.vmem [shape: f32[8,1], index: 4, kind: input, shape index: {}]   ;;  %s444_s5 = inlined_call_operand.vmem [shape: f32[1,8], index: 5, kind: input, shape index: {}]   ;;  %s445_s6 = inlined_call_operand.vmem [shape: s32[8,1], index: 6, kind: input, shape index: {}]   ;;  %s446_s7 = inlined_call_operand.vmem [shape: s32[1,8], index: 7, kind: input, shape index: {}]   ;;  %s447_s8 = inlined_call_operand.hbm [shape: f32[1,1], index: 8, kind: output, shape index: {}]  }
   0x1   :  { %p97_p0 = scmp.lt.s32.totalorder %s440_s1, 0  ;;  %p91_p1 = scmp.lt.s32.totalorder %s439_s0, 0 }
   0x2   :  { %15 = vsyncpa [#allocation7], 0  ;;  %v339_v0 = vmov 0   ;;  %vm130_vm3 = vcmask 64512   ;;  %v340_v18 = vmov 0.0   ;;  %p222_p2 = scmp.gt.s32.totalorder %s440_s1, %s439_s0  ;;  %s255_s16 = sshll.u32 %s447_s8, 4  ;;  %s256_s16 = int_to_ptr.hbm [resolvable:$true] %s255_s16 }
   0x3   :  { %303 = vset.pattern.permute.xlu0 %v339_v0  ;;  %304 = vset.pattern.permute.xlu1 %v339_v0  ;;  %s396_s11 = scalar_select %p97_p0, %s440_s1, 0  ;;  %131 = vst.msk [vmem:[#allocation2] sm:$0xff] %vm130_vm3, %v340_v18  ;;  %vm246_vm10 = vcmask 0  }
   0x4   :  { %s92_s14 = scalar_select %p91_p1, %s439_s0, 0 }
   0x5   :  { %s295_s15 = sshll.u32 %s396_s11, 3  ;;  %s111_s30 = scalar_lea.vmem %s444_s5, %s396_s11 }
   0x6   :  { %s100_s18 = scalar_lea.vmem %s442_s3, %s295_s15  ;;  %s294_s19 = sshll.u32 %s92_s14, 3  ;;  %v155_v13 = vld [vmem:[%s111_s30] sm:$0x1] }
   0x7   :  { %v133_v1 = vld [vmem:[%s100_s18] sm:$0xff]  ;;  %s94_s22 = scalar_lea.vmem %s441_s2, %s294_s19  ;;  %s106_s25 = scalar_lea.vmem %s443_s4, %s294_s19  ;;  %v191_v14 = vmax.f32 %v155_v13, 1e-16 }
   0x8   :  { %149 = vmatpush.xpose.msra.mxu0 %v133_v1  ;;  %v132_v2 = vld [vmem:[%s94_s22] sm:$0xff]  ;;  %s117_s28 = scalar_lea.vmem %s445_s6, %s294_s19  ;;  %s122_s4 = scalar_lea.vmem %s446_s7, %s396_s11 }
   0x9   :  { %v154_v3 = vld [vmem:[%s106_s25] sm:$0xff]  ;;  %vm198_vm4 = vweird.f32 %v191_v14  ;;  %s223_s15 = scalar_select %p222_p2, 2.0, 1.0 }
   0xa   :  { %158 = vperm.xlu0 %303, %v154_v3   ;;  %v180_v4 = vmax.f32 %v154_v3, 1e-16  ;;  %v212_v5 = vld [vmem:[%s117_s28] sm:$0xff]  ;;  %s341_s0 = smov [#allocation6]  }
   0xb   :  { %215 = vperm.xlu1 %304, %v212_v5   ;;  %150 = vmatmul.f32.vlgmr.msra.gmra.mxu0 %v132_v2  ;;  %v305_v16 = vld [vmem:[%s111_s30] ss:$0 sm:$0xff]  ;;  %v225_v48 = vstv %s223_s15  ;;  %s253_s1 = sshll.u32 %s341_s0, 4  ;;  %s254_s1 = int_to_ptr.vmem [resolvable:$true] %s253_s1 }
   0xc   :  { %307 = vrsqrt.f32 %v180_v4  ;;  %vm187_vm0 = vweird.f32 %v180_v4  ;;  %v306_v41 = vld [vmem:[%s122_s4] ss:$0 sm:$0xff] }
   0xd   :  { %309 = vrsqrt.f32 %v191_v14  ;;  %v224_v50 = vld [vmem:[#allocation2] sm:$0xff] }
  0x12   :  { %v308_v6 = vpop.eup %307 }
  0x13   :  { %v182_v7 = vmul.f32 %v308_v6, %v180_v4  ;;  %vm188_vm1 = vweird.f32 %v308_v6  ;;  %v310_v15 = vpop.eup %309 }
  0x14   :  { %vm189_vm2 = vmor %vm187_vm0, %vm188_vm1  ;;  %v193_v17 = vmul.f32 %v310_v15, %v191_v14  ;;  %vm199_vm5 = vweird.f32 %v310_v15 }
  0x15   :  { %v183_v8 = vmul.f32 %v308_v6, %v182_v7  ;;  %vm200_vm6 = vmor %vm198_vm4, %vm199_vm5 }
  0x16   :  { %v194_v21 = vmul.f32 %v310_v15, %v193_v17 }
  0x17   :  { %v184_v9 = vmul.f32 0.5, %v183_v8 }
  0x18   :  { %v195_v25 = vmul.f32 0.5, %v194_v21 }
  0x19   :  { %v185_v10 = vsub.f32 1.5, %v184_v9 }
  0x1a   :  { %v196_v27 = vsub.f32 1.5, %v195_v25 }
  0x1b   :  { %v186_v11 = vmul.f32 %v308_v6, %v185_v10 }
  0x1c   :  { %v197_v28 = vmul.f32 %v310_v15, %v196_v27 }
  0x1d   :  { %v190_v12 = vsel %vm189_vm2, %v308_v6, %v186_v11 }
  0x1e   :  { %204 = vperm.xlu0 %303, %v190_v12   ;;  %v201_v31 = vsel %vm200_vm6, %v310_v15, %v197_v28 }
  0x1f   :  { %v208_v33 = vperm.slane %v201_v31, 0 }
  0x7c   :  { %v159_v19 = vpop.permute.xlu0 %158 }
  0x7d   :  { %v164_v20 = vadd.f32 %v305_v16, %v159_v19  ;;  %v216_v44 = vpop.permute.xlu1 %215 }
  0x7e   :  { %vm218_vm9 = vcmp.eq.s32.totalorder %v216_v44, %v306_v41 }
  0x88   :  { %v151_v22 = vpop.f32.mrf.mxu0 }
  0x89   :  { %v165_v23 = vmul.f32 2.0, %v151_v22 }
  0x8b   :  { %v166_v24 = vsub.f32 %v164_v20, %v165_v23 }
  0x8d   :  { %v167_v26 = vmax.f32 %v166_v24, 0.0 }
  0x8f   :  { %311 = vrsqrt.f32 %v167_v26  ;;  %vm175_vm7 = vcmp.eq.f32.partialorder %v167_v26, inf  ;;  %v178_v40 = vand.u32 2147483648, %v167_v26  ;;  %vm177_vm8 = vcmp.eq.f32.partialorder %v167_v26, 0.0 }
  0x90   :  { %v205_v35 = vpop.permute.xlu0 %204 }
  0x91   :  { %v210_v38 = vmul.f32 %v208_v33, %v205_v35 }
  0x93   :  { %v211_v43 = vmul.f32 %v210_v38, %v151_v22 }
  0x95   :  { %v312_v29 = vpop.eup %311 }
  0x96   :  { %v169_v30 = vmul.f32 %v312_v29, %v167_v26 }
  0x98   :  { %v170_v32 = vmul.f32 %v312_v29, %v169_v30 }
  0x9a   :  { %v171_v34 = vmul.f32 0.5, %v170_v32 }
  0x9c   :  { %v172_v36 = vsub.f32 1.5, %v171_v34 }
  0x9e   :  { %v173_v37 = vmul.f32 %v312_v29, %v172_v36 }
  0xa0   :  { %v174_v39 = vmul.f32 %v173_v37, %v167_v26 }
  0xa2   :  { %v176_v42 = vsel %vm175_vm7, %v167_v26, %v174_v39 }
  0xa3   :  { %v179_v45 = vsel %vm177_vm8, %v178_v40, %v176_v42 }
  0xa4   :  { %v219_v46 = vsub.f32 %v179_v45, %v211_v43 }
  0xa6   :  { %v220_v47 = vsub.f32 0.0, %v219_v46 }
  0xa8   :  { %v221_v49 = vsel %vm218_vm9, %v219_v46, %v220_v47 }
  0xa9   :  { %v226_v51 = vmul.f32 %v225_v48, %v221_v49 }
  0xab   :  { %v227_v52 = vadd.f32 %v226_v51, %v224_v50 }
  0xad   :  { %229 = vst.msk [vmem:[#allocation2] sm:$0xff] %vm130_vm3, %v227_v52 }
  0xb4   :  { %v233_v53 = vld [vmem:[#allocation2] sm:$0xff] }
  0xb5   :  { %v234_v54 = vsel %vm130_vm3, %v233_v53, 0.0 }
  0xb6   :  { %235 = vadd.xlane.f32.xlu1 %v234_v54 }
 0x129   :  { %v236_v55 = vpop.xlane.xlu1 %235 }
 0x12a   :  { %v237_v56 = vrot.slane %v236_v55, 4 }
 0x12c   :  { %v238_v57 = vadd.f32 %v237_v56, %v236_v55 }
 0x12e   :  { %v239_v58 = vrot.slane %v238_v57, 2 }
 0x130   :  { %v240_v59 = vadd.f32 %v239_v58, %v238_v57 }
 0x132   :  { %v241_v60 = vrot.slane %v240_v59, 1 }
 0x134   :  { %v242_v61 = vadd.f32 %v241_v60, %v240_v59 }
 0x136   :  { %298 = vpush %v242_v61 }
 0x167   :  { %s299_s17 = spop %298 }
 0x168   :  { %v244_v62 = vstv %s299_s17 }
 0x169   :  { %v245_v63 = vmul.f32 0.015625, %v244_v62 }
 0x16b   :  { %247 = vst.msk [vmem:[#allocation6] sm:$0x1] %vm246_vm10, %v245_v63 }
 0x16c   :  { %258 = dma.vmem_to_hbm [thread:$0]  %s254_s1, 16, %s256_s16, [#allocation7]  }
 0x16d   :  { %337 = dma.done.wait [#allocation7], 16  }
 0x16e   :  { %338 = vsyncadd [#allocation7], 4294967280 }
 0x16f   :  { %263 = vsyncpa [#allocation7], 1 }

</bundles_post_ra>
